<compile_context>
chip_gen: v7x
topology: tpu7x:2x2x1
jax: 0.10.0
libtpu: 0.0.40
codegen_flags: <defaults>
</compile_context>

<pallas_src>
import jax
import jax.numpy as jnp
from jax.experimental import pallas as pl
from jax.experimental.pallas import tpu as pltpu

LANE = 128

_ACTIVATIONS = {
    "relu": lambda h: jnp.maximum(h, 0.0),
    "tanh": jnp.tanh,
    "gelu": jax.nn.gelu,
    "sigmoid": jax.nn.sigmoid,
}


def _make_mlp_kernel(n_layers, act_fn):
    """Build the fused MLP kernel for a fixed layer count / activation.

    Kernel args: (x_ref, w0, b0, w1, b1, ..., w_{L-1}, b_{L-1}, out_ref, acc_ref)
      x_ref : (TB, tk)  f32 batch tile x feature chunk
      w0    : (tk, h1)  bf16 first-layer weight chunk (streamed along grid k)
      wi/bi : bf16 (in,out) / f32 (1,out), VMEM-resident across the grid
      acc   : (TB, h1)  f32 scratch accumulator for the first layer
    """

    def kernel(x_ref, *refs):
        *wb, out_ref, acc_ref = refs
        k = pl.program_id(1)

        @pl.when(k == 0)
        def _():
            acc_ref[...] = jnp.zeros_like(acc_ref)

        # First layer: accumulate partial products over feature chunks.
        acc_ref[...] += jnp.dot(
            x_ref[...].astype(jnp.bfloat16),
            wb[0][...],
            preferred_element_type=jnp.float32,
        )

        @pl.when(k == pl.num_programs(1) - 1)
        def _():
            h = acc_ref[...] + wb[1][...]  # f32 bias add
            for i in range(1, n_layers):
                # activation after every Linear except the last one
                h = act_fn(h).astype(jnp.bfloat16)
                h = (
                    jnp.dot(h, wb[2 * i][...], preferred_element_type=jnp.float32)
                    + wb[2 * i + 1][...]
                )
            # TODO(synk): training-mode dropout (random masking) not implemented;
            # at inference nn.Dropout is the identity, which is what we reproduce.
            out_ref[...] = h.astype(out_ref.dtype)

    return kernel


def prepare_params(params, *, max_w0_vmem_bytes=8 << 20):
    """One-time conversion of PyTorch-layout f32 params -> kernel layout.

    * weights transposed to (in, out) and cast to bf16,
    * biases reshaped to (1, out) f32,
    * first-layer weight zero-padded along the input dim to a multiple of the
      chosen feature chunk `tk` (so it can be streamed when too big for VMEM),
    * last layer zero-padded along the output dim to a multiple of 128 so the
      kernel's output stores are lane-dense (padding sliced off in wrapper).
    Hoisted out of the per-call path: no transpose/cast/pad happens per forward.
    """
    n = len(params)
    feat = params[0][0].shape[1]
    h1 = params[0][0].shape[0]
    out_dim = params[-1][0].shape[0]

    # Feature chunk for the first-layer weight (bf16): resident if it fits,
    # otherwise stream it in 128-aligned chunks along the reduction axis.
    w0_bytes = feat * h1 * 2
    if w0_bytes <= max_w0_vmem_bytes:
        tk = feat
        feat_pad = feat
    else:
        tk = max(LANE, (max_w0_vmem_bytes // (h1 * 2)) // LANE * LANE)
        feat_pad = pl.cdiv(feat, tk) * tk

    out_pad = max(LANE, pl.cdiv(out_dim, LANE) * LANE)

    prepped = []
    for i, (w, b) in enumerate(params):
        w_t = jnp.asarray(w, jnp.float32).T                 # (in, out)
        b_r = jnp.asarray(b, jnp.float32).reshape(1, -1)    # (1, out)
        if i == 0 and feat_pad != feat:
            w_t = jnp.pad(w_t, ((0, feat_pad - feat), (0, 0)))
        if i == n - 1 and out_pad != out_dim:
            w_t = jnp.pad(w_t, ((0, 0), (0, out_pad - out_dim)))
            b_r = jnp.pad(b_r, ((0, 0), (0, out_pad - out_dim)))
        prepped.append((w_t.astype(jnp.bfloat16), b_r))

    return {
        "params": prepped,
        "tk": tk,
        "feat": feat,
        "feat_pad": feat_pad,
        "out_dim": out_dim,
        "out_pad": out_pad,
    }


def deep_synergy_forward(x, prep, *, tb=128, act="relu"):
    """x: (batch, features) f32.  prep: output of prepare_params."""
    params = prep["params"]
    tk, feat, feat_pad = prep["tk"], prep["feat"], prep["feat_pad"]
    out_dim, out_pad = prep["out_dim"], prep["out_pad"]

    batch = x.shape[0]
    assert x.shape[1] == feat, "feature dim mismatch with prepared params"

    grid_b = pl.cdiv(batch, tb)
    grid_k = feat_pad // tk
    b_pad = grid_b * tb
    if b_pad != batch or feat_pad != feat:
        x = jnp.pad(x, ((0, b_pad - batch), (0, feat_pad - feat)))

    h1 = params[0][0].shape[1]
    kernel = _make_mlp_kernel(len(params), _ACTIVATIONS[act])

    flat_args = []
    in_specs = [pl.BlockSpec((tb, tk), lambda i, k: (i, k))]          # x tile
    vmem = 2 * tb * tk * 4                                            # 2x-buffered x tile

    # First layer: weight chunk streamed along the k axis, bias resident.
    w0, b0 = params[0]
    flat_args += [w0, b0]
    in_specs += [
        pl.BlockSpec((tk, h1), lambda i, k: (k, 0)),
        pl.BlockSpec(b0.shape, lambda i, k: (0, 0)),
    ]
    vmem += 2 * (tk * h1 * 2 + b0.size * 4)

    # Remaining layers: fully VMEM-resident (constant index_map).
    for w, b in params[1:]:
        flat_args += [w, b]
        in_specs += [
            pl.BlockSpec(w.shape, lambda i, k: (0, 0)),
            pl.BlockSpec(b.shape, lambda i, k: (0, 0)),
        ]
        vmem += 2 * (w.size * 2 + b.size * 4)

    vmem += 2 * tb * out_pad * 4      # 2x-buffered out tile
    vmem += tb * h1 * 4               # f32 accumulator scratch
    vmem_limit = int(min(max(vmem + (vmem >> 1) + (2 << 20), 32 << 20), 64 << 20))

    out = pl.pallas_call(
        kernel,
        out_shape=jax.ShapeDtypeStruct((b_pad, out_pad), jnp.float32),
        grid=(grid_b, grid_k),
        in_specs=in_specs,
        out_specs=pl.BlockSpec((tb, out_pad), lambda i, k: (i, 0)),
        scratch_shapes=[pltpu.VMEM((tb, h1), jnp.float32)],
        compiler_params=pltpu.CompilerParams(
            dimension_semantics=("parallel", "arbitrary"),   # megacore on batch
            vmem_limit_bytes=vmem_limit,
        ),
    )(x, *flat_args)
    return out[:batch, :out_dim]


def init_params(key, input_size, layer_sizes):
    """Deterministic init matching the PyTorch module's shapes (PyTorch layout).

    Weights: kaiming_normal_ (fan_in, gain=sqrt(2)) -> std = sqrt(2/fan_in).
    Biases:  PyTorch Linear default uniform(-1/sqrt(fan_in), 1/sqrt(fan_in)).
    """
    params = []
    dims = [input_size] + list(layer_sizes)
    for i in range(len(layer_sizes)):
        key, kw, kb = jax.random.split(key, 3)
        fan_in = dims[i]
        w = jax.random.normal(kw, (dims[i + 1], dims[i]), jnp.float32) * jnp.sqrt(
            2.0 / fan_in
        )
        bound = 1.0 / jnp.sqrt(float(fan_in))
        b = jax.random.uniform(kb, (dims[i + 1],), jnp.float32, -bound, bound)
        params.append((w, b))
    return params


def _reference_forward(x, params, *, bf16_matmul=True):
    """Pure-JAX reference of the PyTorch forward (eval mode)."""
    h = x
    n = len(params)
    for i, (w, b) in enumerate(params):
        if bf16_matmul:
            h = jnp.dot(
                h.astype(jnp.bfloat16),
                jnp.asarray(w, jnp.float32).T.astype(jnp.bfloat16),
                preferred_element_type=jnp.float32,
            ) + b
        else:
            h = h @ w.T + b
        if i < n - 1:
            h = jnp.maximum(h, 0.0)
    return h


if __name__ == "__main__":
    key = jax.random.PRNGKey(0)

    # Small DeepSynergy-style config.
    input_size = 256
    layer_sizes = [256, 128, 1]
    batch = 160   # not a multiple of 128 -> exercises batch padding + 2 tiles

    key, kx, kp = jax.random.split(key, 3)
    x = jax.random.normal(kx, (batch, input_size), jnp.float32)
    params = init_params(kp, input_size, layer_sizes)

    ref = _reference_forward(x, params, bf16_matmul=True)

    # Path 1: first-layer weight fully VMEM-resident (grid_k = 1).
    prep_res = prepare_params(params)
    out_res = jax.block_until_ready(deep_synergy_forward(x, prep_res, tb=128))

    # Path 2: first-layer weight streamed in 128-wide feature chunks (grid_k = 2).
    prep_str = prepare_params(params, max_w0_vmem_bytes=32 * 1024)
    out_str = jax.block_until_ready(deep_synergy_forward(x, prep_str, tb=128))

    assert out_res.shape == (batch, layer_sizes[-1])
    assert out_str.shape == (batch, layer_sizes[-1])
    assert jnp.allclose(out_res, ref, atol=2e-2, rtol=2e-2), "resident path mismatch"
    assert jnp.allclose(out_str, ref, atol=2e-2, rtol=2e-2), "streamed path mismatch"
    assert jnp.allclose(out_res, out_str, atol=2e-2, rtol=2e-2), "path mismatch"

    print("KERNEL_OK")
</pallas_src>

<mosaic_0001>
module attributes {stable_mosaic.version = 11 : i64} {
  func.func @kernel(%arg0: i32, %arg1: i32, %arg2: memref<128x256xf32, #tpu.memory_space<vmem>>, %arg3: memref<256x256xbf16, #tpu.memory_space<vmem>>, %arg4: memref<1x256xf32, #tpu.memory_space<vmem>>, %arg5: memref<256x128xbf16, #tpu.memory_space<vmem>>, %arg6: memref<1x128xf32, #tpu.memory_space<vmem>>, %arg7: memref<128x128xbf16, #tpu.memory_space<vmem>>, %arg8: memref<1x128xf32, #tpu.memory_space<vmem>>, %arg9: memref<128x128xf32, #tpu.memory_space<vmem>>, %arg10: memref<128x256xf32, #tpu.memory_space<vmem>>) attributes {dimension_semantics = [#tpu.dimension_semantics<parallel>, #tpu.dimension_semantics<arbitrary>], iteration_bounds = array<i64: 2, 1>, scalar_prefetch = 0 : i64, scratch_operands = 1 : i64, tpu.core_type = #tpu.core_type<tc>, window_params = [{transform_indices = @transform_0, window_bounds = array<i64: 128, 256>}, {transform_indices = @transform_1, window_bounds = array<i64: 256, 256>}, {pipeline_mode = #tpu.pipeline_mode<synchronous>, transform_indices = @transform_2, window_bounds = array<i64: 1, 256>}, {pipeline_mode = #tpu.pipeline_mode<synchronous>, transform_indices = @transform_3, window_bounds = array<i64: 256, 128>}, {pipeline_mode = #tpu.pipeline_mode<synchronous>, transform_indices = @transform_4, window_bounds = array<i64: 1, 128>}, {pipeline_mode = #tpu.pipeline_mode<synchronous>, transform_indices = @transform_5, window_bounds = array<i64: 128, 128>}, {pipeline_mode = #tpu.pipeline_mode<synchronous>, transform_indices = @transform_6, window_bounds = array<i64: 1, 128>}, {transform_indices = @transform_7, window_bounds = array<i64: 128, 128>}]} {
    %c0_i32 = arith.constant 0 : i32
    %0 = arith.cmpi eq, %arg1, %c0_i32 : i32
    %1 = arith.extui %0 : i1 to i32
    %c0_i32_0 = arith.constant 0 : i32
    %2 = arith.cmpi ne, %1, %c0_i32_0 : i32
    scf.if %2 {
      %cst_10 = arith.constant 0.000000e+00 : f32
      %13 = vector.broadcast %cst_10 : f32 to vector<128x256xf32>
      %c0_11 = arith.constant 0 : index
      %c0_12 = arith.constant 0 : index
      %14 = vector.load %arg10[%c0_11, %c0_12] : memref<128x256xf32, #tpu.memory_space<vmem>>, vector<128x256xf32>
      tpu.vector_store %arg10[%c0_11, %c0_12], %13 {strides = array<i32>} : memref<128x256xf32, #tpu.memory_space<vmem>>, vector<128x256xf32>,
    } else {
    }
    %c0 = arith.constant 0 : index
    %c0_1 = arith.constant 0 : index
    %3 = vector.load %arg10[%c0, %c0_1] : memref<128x256xf32, #tpu.memory_space<vmem>>, vector<128x256xf32>
    %c0_2 = arith.constant 0 : index
    %c0_3 = arith.constant 0 : index
    %4 = vector.load %arg2[%c0_2, %c0_3] : memref<128x256xf32, #tpu.memory_space<vmem>>, vector<128x256xf32>
    %5 = arith.truncf %4 : vector<128x256xf32> to vector<128x256xbf16>
    %c0_4 = arith.constant 0 : index
    %c0_5 = arith.constant 0 : index
    %6 = vector.load %arg3[%c0_4, %c0_5] : memref<256x256xbf16, #tpu.memory_space<vmem>>, vector<256x256xbf16>
    %cst = arith.constant dense<0.000000e+00> : vector<128x256xf32>
    %7 = tpu.matmul %5, %6, %cst {dimension_numbers = #tpu.dot_dimension_numbers<[1], [0], [0], [1], [0, 0, 1, 1], [], []>} : vector<128x256xbf16>, vector<256x256xbf16>, vector<128x256xf32> -> vector<128x256xf32>
    %8 = arith.addf %3, %7 : vector<128x256xf32>
    %c0_6 = arith.constant 0 : index
    %c0_7 = arith.constant 0 : index
    %9 = vector.load %arg10[%c0_6, %c0_7] : memref<128x256xf32, #tpu.memory_space<vmem>>, vector<128x256xf32>
    tpu.vector_store %arg10[%c0_6, %c0_7], %8 {strides = array<i32>} : memref<128x256xf32, #tpu.memory_space<vmem>>, vector<128x256xf32>,
    %c0_i32_8 = arith.constant 0 : i32
    %10 = arith.cmpi eq, %arg1, %c0_i32_8 : i32
    %11 = arith.extui %10 : i1 to i32
    %c0_i32_9 = arith.constant 0 : i32
    %12 = arith.cmpi ne, %11, %c0_i32_9 : i32
    scf.if %12 {
      %c0_10 = arith.constant 0 : index
      %c0_11 = arith.constant 0 : index
      %13 = vector.load %arg10[%c0_10, %c0_11] : memref<128x256xf32, #tpu.memory_space<vmem>>, vector<128x256xf32>
      %c0_12 = arith.constant 0 : index
      %c0_13 = arith.constant 0 : index
      %14 = vector.load %arg4[%c0_12, %c0_13] : memref<1x256xf32, #tpu.memory_space<vmem>>, vector<1x256xf32>
      %15 = vector.broadcast %14 : vector<1x256xf32> to vector<128x256xf32>
      %16 = arith.addf %13, %15 : vector<128x256xf32>
      %cst_14 = arith.constant 0.000000e+00 : f32
      %17 = vector.broadcast %cst_14 : f32 to vector<128x256xf32>
      %18 = arith.maximumf %16, %17 : vector<128x256xf32>
      %19 = arith.truncf %18 : vector<128x256xf32> to vector<128x256xbf16>
      %c0_15 = arith.constant 0 : index
      %c0_16 = arith.constant 0 : index
      %20 = vector.load %arg5[%c0_15, %c0_16] : memref<256x128xbf16, #tpu.memory_space<vmem>>, vector<256x128xbf16>
      %cst_17 = arith.constant dense<0.000000e+00> : vector<128x128xf32>
      %21 = tpu.matmul %19, %20, %cst_17 {dimension_numbers = #tpu.dot_dimension_numbers<[1], [0], [0], [1], [0, 0, 1, 1], [], []>} : vector<128x256xbf16>, vector<256x128xbf16>, vector<128x128xf32> -> vector<128x128xf32>
      %c0_18 = arith.constant 0 : index
      %c0_19 = arith.constant 0 : index
      %22 = vector.load %arg6[%c0_18, %c0_19] : memref<1x128xf32, #tpu.memory_space<vmem>>, vector<1x128xf32>
      %23 = vector.broadcast %22 : vector<1x128xf32> to vector<128x128xf32>
      %24 = arith.addf %21, %23 : vector<128x128xf32>
      %cst_20 = arith.constant 0.000000e+00 : f32
      %25 = vector.broadcast %cst_20 : f32 to vector<128x128xf32>
      %26 = arith.maximumf %24, %25 : vector<128x128xf32>
      %27 = arith.truncf %26 : vector<128x128xf32> to vector<128x128xbf16>
      %c0_21 = arith.constant 0 : index
      %c0_22 = arith.constant 0 : index
      %28 = vector.load %arg7[%c0_21, %c0_22] : memref<128x128xbf16, #tpu.memory_space<vmem>>, vector<128x128xbf16>
      %cst_23 = arith.constant dense<0.000000e+00> : vector<128x128xf32>
      %29 = tpu.matmul %27, %28, %cst_23 {dimension_numbers = #tpu.dot_dimension_numbers<[1], [0], [0], [1], [0, 0, 1, 1], [], []>} : vector<128x128xbf16>, vector<128x128xbf16>, vector<128x128xf32> -> vector<128x128xf32>
      %c0_24 = arith.constant 0 : index
      %c0_25 = arith.constant 0 : index
      %30 = vector.load %arg8[%c0_24, %c0_25] : memref<1x128xf32, #tpu.memory_space<vmem>>, vector<1x128xf32>
      %31 = vector.broadcast %30 : vector<1x128xf32> to vector<128x128xf32>
      %32 = arith.addf %29, %31 : vector<128x128xf32>
      %c0_26 = arith.constant 0 : index
      %c0_27 = arith.constant 0 : index
      %33 = vector.load %arg9[%c0_26, %c0_27] : memref<128x128xf32, #tpu.memory_space<vmem>>, vector<128x128xf32>
      tpu.vector_store %arg9[%c0_26, %c0_27], %32 {strides = array<i32>} : memref<128x128xf32, #tpu.memory_space<vmem>>, vector<128x128xf32>,
    } else {
    }
    return
  }
  func.func @transform_0(%arg0: i32, %arg1: i32) -> (i32, i32) {
    %c0_i32 = arith.constant 0 : i32
    return %arg0, %arg1 : i32, i32
  }
  func.func @transform_1(%arg0: i32, %arg1: i32) -> (i32, i32) {
    %c0_i32 = arith.constant 0 : i32
    %c0_i32_0 = arith.constant 0 : i32
    return %arg1, %c0_i32 : i32, i32
  }
  func.func @transform_2(%arg0: i32, %arg1: i32) -> (i32, i32) {
    %c0_i32 = arith.constant 0 : i32
    %c0_i32_0 = arith.constant 0 : i32
    %c0_i32_1 = arith.constant 0 : i32
    return %c0_i32, %c0_i32_0 : i32, i32
  }
  func.func @transform_3(%arg0: i32, %arg1: i32) -> (i32, i32) {
    %c0_i32 = arith.constant 0 : i32
    %c0_i32_0 = arith.constant 0 : i32
    %c0_i32_1 = arith.constant 0 : i32
    return %c0_i32, %c0_i32_0 : i32, i32
  }
  func.func @transform_4(%arg0: i32, %arg1: i32) -> (i32, i32) {
    %c0_i32 = arith.constant 0 : i32
    %c0_i32_0 = arith.constant 0 : i32
    %c0_i32_1 = arith.constant 0 : i32
    return %c0_i32, %c0_i32_0 : i32, i32
  }
  func.func @transform_5(%arg0: i32, %arg1: i32) -> (i32, i32) {
    %c0_i32 = arith.constant 0 : i32
    %c0_i32_0 = arith.constant 0 : i32
    %c0_i32_1 = arith.constant 0 : i32
    return %c0_i32, %c0_i32_0 : i32, i32
  }
  func.func @transform_6(%arg0: i32, %arg1: i32) -> (i32, i32) {
    %c0_i32 = arith.constant 0 : i32
    %c0_i32_0 = arith.constant 0 : i32
    %c0_i32_1 = arith.constant 0 : i32
    return %c0_i32, %c0_i32_0 : i32, i32
  }
  func.func @transform_7(%arg0: i32, %arg1: i32) -> (i32, i32) {
    %c0_i32 = arith.constant 0 : i32
    %c0_i32_0 = arith.constant 0 : i32
    return %arg0, %c0_i32 : i32, i32
  }
}

</mosaic_0001>

<bundles_post_ra>
// kernel: tpu_custom_call.1
= control target key start
LH: loop header
LB: loop body
LE: loop exit
PB: predicated region body
PF: predicated region fallthrough
CT: control target
= control target key end

     0   :  { %s2578_s0 = inlined_call_operand.hbm [shape: f32[256,256], index: 0, kind: input, shape index: {}]   ;;  %s2579_s1 = inlined_call_operand.hbm [shape: bf16[256,256], index: 1, kind: input, shape index: {}]   ;;  %s2580_s2 = inlined_call_operand.vmem [shape: f32[1,256], index: 2, kind: input, shape index: {}]   ;;  %s2581_s3 = inlined_call_operand.hbm [shape: bf16[256,128], index: 3, kind: input, shape index: {}]   ;;  %s2582_s4 = inlined_call_operand.vmem [shape: f32[1,128], index: 4, kind: input, shape index: {}]   ;;  %s2583_s5 = inlined_call_operand.hbm [shape: bf16[128,128], index: 5, kind: input, shape index: {}]   ;;  %s2584_s6 = inlined_call_operand.vmem [shape: f32[1,128], index: 6, kind: input, shape index: {}]   ;;  %s2585_s7 = inlined_call_operand.hbm [shape: f32[256,128], index: 7, kind: output, shape index: {}]  }
   0x1   :  { %2593 = sst [smem:[#allocation18_spill]] %s2579_s1 }
   0x2   :  { %2594 = sst [smem:[#allocation19_spill]] %s2585_s7 }
   0x3   :  { %12 = vsyncpa [#allocation4], 0 }
   0x4   :  { %14 = vsyncpa [#allocation4 + $0x1], 0 }
   0x5   :  { %15 = vsyncpa [#allocation7], 0 }
   0x6   :  { %16 = vsyncpa [#allocation10], 0 }
   0x7   :  { %17 = vsyncpa [#allocation5], 0 }
   0x8   :  { %19 = vsyncpa [#allocation5 + $0x1], 0  ;;  %s2180_s24 = smov 0   ;;  %s2182_s25 = smov 0  }
   0x9   :  { %s2184_s26 = smov 0   ;;  %s2186_s27 = smov 0  }
   0xa   :  { %s2188_s28 = smov 0   ;;  %s2190_s29 = smov 0  }
   0xb LB: > { %2595 = sst [smem:[#allocation16_spill]] %s2105_s24  ;;  %s1553_s30 = sadd.s32 4294967295, %s2125_s29   ;;  %s2125_s29 = sphi %s2190_s29, %s25_s29   ;;  %s2121_s28 = sphi %s2188_s28, %s2621_s28   ;;  %s2117_s27 = sphi %s2186_s27, %s2620_s27   ;;  %s2113_s26 = sphi %s2184_s26, %s2619_s26   ;;  %s2109_s25 = sphi %s2182_s25, %s2618_s25   ;;  %s2105_s24 = sphi %s2180_s24, %s2617_s24  }
   0xc   : > { %s1554_s8 = sadd.s32 4294967294, %s2125_s29   ;;  %p59_p0 = scmp.ne.s32.totalorder %s2109_s25, %s2105_s24 }
   0xd   : > { %p2214_p1 = scmp.eq.s32.totalorder %s1553_s30, 0  ;;  %p2218_p2 = scmp.eq.s32.totalorder %s1553_s30, 1 }
   0xe   : > { %p220_p3 = scmp.eq.s32.totalorder %s1554_s8, 1  ;;  %p1555_p5 = scmp.ge.s32.totalorder %s2125_s29, 1 }
   0xf   : > { %s2596_s9 = scalar_select %p2214_p1, 1, 0 }
  0x10   : > { %s2597_s10 = scalar_select %p2218_p2, 1, 0 }
  0x11   : > { %p2224_p4 = por %p2214_p1, %p59_p0  ;;  %p2229_p6 = por %p220_p3, %p59_p0 }
  0x12   : > { %p227_p7 = scmp.lt.s32.totalorder %s2125_s29, 3  ;;  %s2127_s14 = smov [#allocation6]  }
  0x13   : > { %s2598_s11 = scalar_select %p2224_p4, 1, 0 }
  0x14   : > { %s2599_s12 = scalar_select %p2229_p6, 1, 0 }
  0x15   : > { %p2234_p8 = pnand %p1555_p5, %p227_p7  ;;  %s243_s15 = sshll.u32 %s2127_s14, 4  ;;  %s2238_s15 = int_to_ptr.vmem [resolvable:$true] %s243_s15 }
  0x16   : > { %2600 = sst [smem:[#allocation17_spill]] %s2599_s12  ;;  %s2128_s17 = smov [#allocation8]  }
  0x17   : > { %s2601_s13 = scalar_select %p2234_p8, 1, 0 }
  0x18   : > { %p1764_p9 = pneg %p2234_p8  ;;  %s259_s18 = sshll.u32 %s2128_s17, 4  ;;  %s2249_s18 = int_to_ptr.vmem [resolvable:$true] %s259_s18 }
  0x19   : > { %s2603_s1 = sld [smem:[#allocation18_spill]] }
  0x1a   : > { %p2245_p11 = pnand %p1764_p9, %p2214_p1 }
  0x1c   : > { %p2259_p13 = pneg %p2245_p11 }
  0x1f   : > { %s1921_s21 = scalar_lea.hbm %s2603_s1, 4096 }
  0x20   : > { %p1922_p12 = scmp.ne.s32.totalorder %s2603_s1, %s1921_s21  ;;  %p1928_p5 = scmp.lt.u32.totalorder %s1921_s21, %s2603_s1 }
  0x22   : > { %p1924_p0 = pnand %p2259_p13, %p1922_p12 }
  0x24   : > { %p1925_p3 = pneg %p1924_p0 }
  0x26   : > { %p1930_p7 = pnand %p1928_p5, %p1925_p3 }
  0x28   : > { %1933 = shalt.err (!%p1930_p7)
}
  0x29   : > { %s1934_s17 = scalar_lea.vmem %s2238_s15, 4096  ;;  %p1942_p1 = scmp.lt.s32.totalorder %s2238_s15, %s2238_s15 }
  0x2a   : > { %p1935_p9 = scmp.ne.s32.totalorder %s2238_s15, %s1934_s17  ;;  %p1943_p4 = scmp.lt.s32.totalorder %s1934_s17, %s1934_s17 }
  0x2c   : > { %p1937_p10 = pnand %p1935_p9, %p2259_p13  ;;  %p1944_p12 = por %p1943_p4, %p1942_p1 }
  0x2e   : > { %p1938_p6 = pneg %p1937_p10 }
  0x30   : > { %p1945_p0 = pnand %p1944_p12, %p1938_p6 }
  0x32   : > { %1948 = shalt.err (!%p1945_p0)
}
  0x33   : > { %s2129_s19 = smov 128   ;;  %s2130_s20 = smov 8  }
  0x34   : > { %1767 = dma.hbm_to_vmem [thread:$0]  (!%p2245_p11), %s2603_s1, 4096, %s2238_s15, [#allocation7], %s2129_s19, %s2129_s19, %s2130_s20  }
  0x35   : > { %s1949_s14 = scalar_lea.hbm %s2581_s3, 2048 }
  0x36   : > { %p1950_p1 = scmp.ne.s32.totalorder %s2581_s3, %s1949_s14  ;;  %p1956_p10 = scmp.lt.u32.totalorder %s1949_s14, %s2581_s3 }
  0x38   : > { %p1952_p4 = pnand %p1950_p1, %p2259_p13 }
  0x3a   : > { %p1953_p6 = pneg %p1952_p4 }
  0x3c   : > { %p1958_p3 = pnand %p1956_p10, %p1953_p6 }
  0x3e   : > { %1961 = shalt.err (!%p1958_p3)
}
  0x3f   : > { %s1962_s15 = scalar_lea.vmem %s2249_s18, 2048  ;;  %p1970_p12 = scmp.lt.s32.totalorder %s2249_s18, %s2249_s18 }
  0x40   : > { %p1963_p5 = scmp.ne.s32.totalorder %s2249_s18, %s1962_s15  ;;  %p1971_p0 = scmp.lt.s32.totalorder %s1962_s15, %s1962_s15 }
  0x42   : > { %p1965_p7 = pnand %p1963_p5, %p2259_p13  ;;  %p1972_p1 = por %p1971_p0, %p1970_p12 }
  0x44   : > { %p1966_p9 = pneg %p1965_p7 }
  0x46   : > { %p1973_p4 = pnand %p1972_p1, %p1966_p9 }
  0x48   : > { %1976 = shalt.err (!%p1973_p4)
}
  0x49   : > { %s2131_s24 = smov 64   ;;  %s2132_s7 = smov 4  }
  0x4a   : > { %1770 = dma.hbm_to_vmem [thread:$0]  (!%p2245_p11), %s2581_s3, 2048, %s2249_s18, [#allocation7], %s2131_s24, %s2131_s24, %s2132_s7  }
  0x4b   : > { %s2133_s20 = smov [#allocation9]   ;;  %s1977_s8 = scalar_lea.hbm %s2583_s5, 1024 }
  0x4c   : > { %s275_s21 = sshll.u32 %s2133_s20, 4  ;;  %p1978_p6 = scmp.ne.s32.totalorder %s2583_s5, %s1977_s8  ;;  %s276_s21 = int_to_ptr.vmem [resolvable:$true] %s275_s21 }
  0x4d   : > { %p1984_p5 = scmp.lt.u32.totalorder %s1977_s8, %s2583_s5 }
  0x4e   : > { %p1980_p10 = pnand %p1978_p6, %p2259_p13 }
  0x50   : > { %p1981_p3 = pneg %p1980_p10 }
  0x52   : > { %p1986_p7 = pnand %p1984_p5, %p1981_p3 }
  0x54   : > { %1989 = shalt.err (!%p1986_p7)
}
  0x55   : > { %s1990_s18 = scalar_lea.vmem %s276_s21, 1024  ;;  %p1998_p1 = scmp.lt.s32.totalorder %s276_s21, %s276_s21 }
  0x56   : > { %p1991_p9 = scmp.ne.s32.totalorder %s276_s21, %s1990_s18  ;;  %p1999_p4 = scmp.lt.s32.totalorder %s1990_s18, %s1990_s18 }
  0x58   : > { %p1993_p12 = pnand %p1991_p9, %p2259_p13  ;;  %p2000_p8 = por %p1999_p4, %p1998_p1 }
  0x5a   : > { %p1994_p0 = pneg %p1993_p12 }
  0x5c   : > { %p2001_p2 = pnand %p2000_p8, %p1994_p0 }
  0x5e   : > { %2004 = shalt.err (!%p2001_p2)
}
  0x5f   : > { %1773 = dma.hbm_to_vmem [thread:$0]  (!%p2245_p11), %s2583_s5, 1024, %s276_s21, [#allocation10], %s2131_s24, %s2131_s24, %s2132_s7  }
  0x60   : > { %s37_s1 = sadd.s32 1, %s2121_s28  ;;  %s46_s30 = sadd.s32 1, %s2113_s26 }
  0x61   : > { %p39_p8 = scmp.ge.s32.totalorder %s37_s1, 2  ;;  %p53_p2 = scmp.ne.s32.totalorder %s2113_s26, %s2109_s25 }
  0x62   : > { %p54_p13 = scmp.eq.s32.totalorder %s2125_s29, 0  ;;  %p2606_p10 = scmp.ne.s32.totalorder %s2597_s10, 0 }
  0x63   : > { %s2623_s1 = smov (%p39_p8, %s37_s1), 0  ;;  %p1785_p11 = scmp.lt.s32.totalorder %s2125_s29, 2 }
  0x64   : > { %p2328_p6 = por %p54_p13, %p53_p2  ;;  %p2334_p3 = por %p2606_p10, %p53_p2 }
  0x65   : > { %s41_s22 = ssub.s32 %s2121_s28, %s2623_s1  ;;  %s292_s24 = sand.u32 1, %s2113_s26  }
  0x66   : > { %p44_p5 = scmp.eq.s32.totalorder %s41_s22, 0  ;;  %s1560_s7 = sshll.u32 %s292_s24, 8 }
  0x67   : > { %s1634_s23 = sshll.u32 %s2121_s28, 12  ;;  %s296_s10 = scalar_lea.vmem [#allocation3], %s1560_s7 }
  0x68   : > { %s2343_s21 = scalar_select %p44_p5, %s2113_s26, %s46_s30  }
  0x69   : > { %s2349_s17 = scalar_lea.hbm %s2578_s0, %s1634_s23  ;;  %s306_s15 = sshll.u32 %s296_s10, 4  ;;  %s2351_s15 = int_to_ptr.vmem [resolvable:$true] %s306_s15 }
  0x6a   : > { %p2355_p7 = pnand %p1785_p11, %p2328_p6  ;;  %s2359_s12 = scalar_lea.sflag [#allocation4], %s292_s24 }
  0x6b   : > { %s2005_s19 = scalar_lea.hbm %s2349_s17, 4096  ;;  %s2010_s16 = scalar_lea.hbm %s2578_s0, 8192 }
  0x6c   : > { %p2006_p9 = scmp.ne.s32.totalorder %s2349_s17, %s2005_s19  ;;  %p2007_p12 = pneg %p2355_p7 }
  0x6d   : > { %p2011_p4 = scmp.lt.u32.totalorder %s2349_s17, %s2578_s0  ;;  %p2012_p8 = scmp.lt.u32.totalorder %s2010_s16, %s2005_s19 }
  0x6e   : > { %p2008_p0 = pnand %p2007_p12, %p2006_p9  ;;  %p2014_p13 = scmp.lt.u32.totalorder %s2005_s19, %s2349_s17 }
  0x6f   : > { %p2013_p2 = por %p2012_p8, %p2011_p4 }
  0x70   : > { %p2009_p1 = pneg %p2008_p0 }
  0x71   : > { %p2015_p6 = por %p2014_p13, %p2013_p2 }
  0x73   : > { %p2016_p10 = pnand %p2015_p6, %p2009_p1 }
  0x75   : > { %2019 = shalt.err (!%p2016_p10)
}
  0x76   : > { %s2020_s24 = scalar_lea.vmem %s2351_s15, 4096  ;;  %s2134_s8 = smov [#allocation3]  }
  0x77   : > { %p2021_p11 = scmp.ne.s32.totalorder %s2351_s15, %s2020_s24  ;;  %s2025_s14 = sshll.u32 %s2134_s8, 4  ;;  %s2026_s14 = int_to_ptr.vmem [resolvable:$false] %s2025_s14 }
  0x78   : > { %s2027_s10 = scalar_lea.vmem %s2026_s14, 8192  ;;  %p2028_p0 = scmp.lt.s32.totalorder %s2351_s15, %s2026_s14 }
  0x79   : > { %p2023_p5 = pnand %p2021_p11, %p2007_p12  ;;  %p2029_p4 = scmp.lt.s32.totalorder %s2027_s10, %s2020_s24 }
  0x7b   : > { %p2024_p9 = pneg %p2023_p5  ;;  %p2030_p8 = por %p2029_p4, %p2028_p0 }
  0x7d   : > { %p2031_p2 = pnand %p2030_p8, %p2024_p9 }
  0x7f   : > { %2034 = shalt.err (!%p2031_p2)
}
  0x80   : > { %s2135_s19 = smov 256   ;;  %s2136_s30 = smov 16  }
  0x81   : > { %1777 = dma.hbm_to_vmem [thread:$0]  (!%p2355_p7), %s2349_s17, 4096, %s2351_s15, %s2359_s12, %s2135_s19, %s2135_s19, %s2136_s30  }
  0x82   : > { %p2609_p12 = scmp.ne.s32.totalorder %s2601_s13, 0 }
  0x83   : > { %s2390_s22 = sand.u32 (!%p2609_p12), 1, %s2109_s25   ;;  %p2610_p1 = scmp.ne.s32.totalorder (!%p2609_p12), %s2598_s11, 0 }
  0x84   : > { %318 = sbr.rel (%p2609_p12) target bundleno = 943 (0x3af), region = 48  ;;  %s1565_s16 = sshll.u32 (!%p2609_p12), %s2390_s22, 8 }
  0x85   : > { %s321_s7 = scalar_lea.sflag (!%p2609_p12), [#allocation4], %s2390_s22  ;;  %s2394_s23 = scalar_lea.vmem (!%p2609_p12), [#allocation3], %s1565_s16 }
  0x8b   : > { %2088 = dma.done.wait (%p2610_p1), %s321_s7, 4096  }
  0x8c   : > { %2090 = vsyncadd (%p2610_p1), %s321_s7, 4294963200  ;;  %p2611_p7 = scmp.ne.s32.totalorder %s2596_s9, 0 }
  0x8e   : > { %2092 = dma.done.wait (%p2611_p7), [#allocation7], 6144  }
  0x8f   : > { %2094 = vsyncadd (%p2611_p7), [#allocation7], 4294961152 }
  0x90   : > { %2096 = dma.done.wait (%p2611_p7), [#allocation10], 1024  }
  0x91   : > { %2098 = vsyncadd (%p2611_p7), [#allocation10], 4294966272  ;;  %v1849_v0 = vld [vmem:[#allocation6 + $0x4] ss:$8 sps:$4 sm:$0xff]   ;;  %v1851_v1 = vld [vmem:[#allocation6] ss:$8 sps:$4 sm:$0xff]  }
  0x92   : > { %680 = vmatprep.subr.bf16.mxu0 %v1849_v0  ;;  %v1852_v2 = vld [vmem:[#allocation6 + $0x14] ss:$8 sps:$4 sm:$0xff]   ;;  %v1854_v3 = vld [vmem:[#allocation6 + $0x10] ss:$8 sps:$4 sm:$0xff]   ;;  %v1855_v4 = vld [vmem:[#allocation6 + $0x24] ss:$8 sps:$4 sm:$0xff]  }
  0x93   : > { %681 = vmatpush1.bf16.msra.mxu0 %v1851_v1  ;;  %v1857_v5 = vld [vmem:[#allocation6 + $0x20] ss:$8 sps:$4 sm:$0xff]   ;;  %v1858_v6 = vld [vmem:[#allocation6 + $0x34] ss:$8 sps:$4 sm:$0xff]   ;;  %v1860_v7 = vld [vmem:[#allocation6 + $0x30] ss:$8 sps:$4 sm:$0xff]  }
  0x94   : > { %682 = vmatprep.subr.bf16.mxu0 %v1852_v2  ;;  %v1861_v8 = vld [vmem:[#allocation6 + $0x44] ss:$8 sps:$4 sm:$0xff]   ;;  %v1863_v9 = vld [vmem:[#allocation6 + $0x40] ss:$8 sps:$4 sm:$0xff]   ;;  %v1864_v10 = vld [vmem:[#allocation6 + $0x54] ss:$8 sps:$4 sm:$0xff]  }
  0x95   : > { %v1866_v11 = vld [vmem:[#allocation6 + $0x50] ss:$8 sps:$4 sm:$0xff]   ;;  %v1867_v12 = vld [vmem:[#allocation6 + $0x64] ss:$8 sps:$4 sm:$0xff]   ;;  %v1869_v16 = vld [vmem:[#allocation6 + $0x60] ss:$8 sps:$4 sm:$0xff]  }
  0x96   : > { %v441_v13 = vld [vmem:[%s2394_s23 + $0x8] sm:$0xff]  ;;  %v443_v14 = vld [vmem:[%s2394_s23 + $0x18] sm:$0xff]  ;;  %v1897_v22 = vld [vmem:[#allocation8 + $0x40] sm:$0xff]   ;;  %s1569_s15 = sshll.u32 %s2390_s22, 7  ;;  %s1635_s8 = sshll.u32 %s2117_s27, 11 }
  0x97   : > { %683 = vmatpush1.bf16.msra.mxu0 %v1854_v3  ;;  %v473_v15 = vpack.c.bf16 %v443_v14, %v441_v13  ;;  %v1870_v17 = vld [vmem:[#allocation6 + $0x74] ss:$8 sps:$4 sm:$0xff]   ;;  %v1872_v18 = vld [vmem:[#allocation6 + $0x70] ss:$8 sps:$4 sm:$0xff]   ;;  %v1873_v19 = vld [vmem:[#allocation6 + $0x84] ss:$8 sps:$4 sm:$0xff]   ;;  %1636 = vmatprep.subr.bf16.mxu1 %v1897_v22 }
  0x98   : > { %684 = vmatprep.subr.bf16.mxu0 %v1855_v4  ;;  %v1875_v20 = vld [vmem:[#allocation6 + $0x80] ss:$8 sps:$4 sm:$0xff]   ;;  %v1876_v21 = vld [vmem:[#allocation6 + $0x94] ss:$8 sps:$4 sm:$0xff]   ;;  %v1878_v23 = vld [vmem:[#allocation6 + $0x90] ss:$8 sps:$4 sm:$0xff]  }
  0x99   : > { %712 = vmatprep.mubr.bf16.mxu0 %v473_v15  ;;  %v1898_v24 = vld [vmem:[#allocation8] sm:$0xff]   ;;  %v1899_v26 = vld [vmem:[#allocation8 + $0x48] sm:$0xff]   ;;  %v1901_v28 = vld [vmem:[#allocation8 + $0x50] sm:$0xff]   ;;  %s2504_s24 = scalar_lea.vmem [#allocation11], %s1569_s15  ;;  %s2612_s30 = sld [smem:[#allocation19_spill]] }
  0x9a   : > { %v1879_v25 = vld [vmem:[#allocation6 + $0xa4] ss:$8 sps:$4 sm:$0xff]   ;;  %1637 = vmatpush3.bf16.msra.mxu1 %v1898_v24  ;;  %v1881_v29 = vld [vmem:[#allocation6 + $0xa0] ss:$8 sps:$4 sm:$0xff]   ;;  %v1882_v30 = vld [vmem:[#allocation6 + $0xb4] ss:$8 sps:$4 sm:$0xff]  }
  0x9b   : > { %685 = vmatpush1.bf16.msra.mxu0 %v1857_v5  ;;  %v1900_v27 = vld [vmem:[#allocation8 + $0x8] sm:$0xff]   ;;  %1638 = vmatprep.subr.bf16.mxu1 %v1899_v26  ;;  %v1902_v31 = vld [vmem:[#allocation8 + $0x10] sm:$0xff]   ;;  %v1903_v32 = vld [vmem:[#allocation8 + $0x58] sm:$0xff]   ;;  %s1438_s14 = sshll.u32 %s2504_s24, 4  ;;  %s1425_s27 = scalar_lea.sflag [#allocation5], %s2390_s22  ;;  %s2526_s14 = int_to_ptr.vmem [resolvable:$true] %s1438_s14 }
  0x9c   : > { %686 = vmatprep.subr.bf16.mxu0 %v1858_v6  ;;  %v1884_v33 = vld [vmem:[#allocation6 + $0xb0] ss:$8 sps:$4 sm:$0xff]   ;;  %v1885_v35 = vld [vmem:[#allocation6 + $0xc4] ss:$8 sps:$4 sm:$0xff]   ;;  %v1887_v37 = vld [vmem:[#allocation6 + $0xc0] ss:$8 sps:$4 sm:$0xff]  }
  0x9d   : > { %v1904_v34 = vld [vmem:[#allocation8 + $0x18] sm:$0xff]   ;;  %v1905_v36 = vld [vmem:[#allocation8 + $0x60] sm:$0xff]   ;;  %v1907_v40 = vld [vmem:[#allocation8 + $0x68] sm:$0xff]   ;;  %s2035_s7 = scalar_lea.vmem %s2526_s14, 2048 }
  0x9e   : > { %1639 = vmatpush3.bf16.msra.mxu1 %v1900_v27  ;;  %v1906_v38 = vld [vmem:[#allocation8 + $0x20] sm:$0xff]   ;;  %v1888_v39 = vld [vmem:[#allocation6 + $0xd4] ss:$8 sps:$4 sm:$0xff]   ;;  %v1890_v41 = vld [vmem:[#allocation6 + $0xd0] ss:$8 sps:$4 sm:$0xff]   ;;  %p2036_p13 = scmp.ne.s32.totalorder %s2526_s14, %s2035_s7 }
  0x9f   : > { %687 = vmatpush1.bf16.msra.mxu0 %v1860_v7  ;;  %1640 = vmatprep.subr.bf16.mxu1 %v1901_v28  ;;  %v1891_v42 = vld [vmem:[#allocation6 + $0xe4] ss:$8 sps:$4 sm:$0xff]   ;;  %v1893_v43 = vld [vmem:[#allocation6 + $0xe0] ss:$8 sps:$4 sm:$0xff]   ;;  %v1894_v44 = vld [vmem:[#allocation6 + $0xf4] ss:$8 sps:$4 sm:$0xff]   ;;  %s2524_s16 = scalar_lea.hbm %s2612_s30, %s1635_s8 }
  0xa0   : > { %688 = vmatprep.subr.bf16.mxu0 %v1861_v8  ;;  %v1896_v45 = vld [vmem:[#allocation6 + $0xf0] ss:$8 sps:$4 sm:$0xff]   ;;  %v440_v46 = vld [vmem:[%s2394_s23] sm:$0xff]  ;;  %v445_v48 = vld [vmem:[%s2394_s23 + $0x28] sm:$0xff]  ;;  %p2037_p6 = pnand %p2036_p13, %p2334_p3 }
  0xa1   : > { %v442_v47 = vld [vmem:[%s2394_s23 + $0x10] sm:$0xff]  ;;  %v447_v49 = vld [vmem:[%s2394_s23 + $0x38] sm:$0xff]  ;;  %v444_v52 = vld [vmem:[%s2394_s23 + $0x20] sm:$0xff] }
  0xa2   : > { %1641 = vmatpush3.bf16.msra.mxu1 %v1902_v31  ;;  %v472_v50 = vpack.c.bf16 %v442_v47, %v440_v46  ;;  %v475_v51 = vpack.c.bf16 %v447_v49, %v445_v48  ;;  %v446_v53 = vld [vmem:[%s2394_s23 + $0x30] sm:$0xff]  ;;  %v449_v54 = vld [vmem:[%s2394_s23 + $0x48] sm:$0xff]  ;;  %v451_v55 = vld [vmem:[%s2394_s23 + $0x58] sm:$0xff]  ;;  %p2038_p10 = pneg %p2037_p6 }
  0xa3   : > { %689 = vmatpush1.bf16.msra.mxu0 %v1863_v9  ;;  %1642 = vmatprep.subr.bf16.mxu1 %v1903_v32  ;;  %v474_v56 = vpack.c.bf16 %v446_v53, %v444_v52  ;;  %v477_v57 = vpack.c.bf16 %v451_v55, %v449_v54  ;;  %v448_v58 = vld [vmem:[%s2394_s23 + $0x40] sm:$0xff]  ;;  %v450_v59 = vld [vmem:[%s2394_s23 + $0x50] sm:$0xff]  ;;  %v453_v60 = vld [vmem:[%s2394_s23 + $0x68] sm:$0xff] }
  0xa4   : > { %690 = vmatprep.subr.bf16.mxu0 %v1864_v10  ;;  %v455_v61 = vld [vmem:[%s2394_s23 + $0x78] sm:$0xff]  ;;  %v476_v62 = vpack.c.bf16 %v450_v59, %v448_v58  ;;  %v452_v0 = vld [vmem:[%s2394_s23 + $0x60] sm:$0xff]  ;;  %v454_v1 = vld [vmem:[%s2394_s23 + $0x70] sm:$0xff] }
  0xa5   : > { %v479_v63 = vpack.c.bf16 %v455_v61, %v453_v60  ;;  %v457_v2 = vld [vmem:[%s2394_s23 + $0x88] sm:$0xff]  ;;  %v459_v3 = vld [vmem:[%s2394_s23 + $0x98] sm:$0xff]  ;;  %v478_v4 = vpack.c.bf16 %v454_v1, %v452_v0  ;;  %v456_v6 = vld [vmem:[%s2394_s23 + $0x80] sm:$0xff] }
  0xa6   : > { %1643 = vmatpush3.bf16.msra.mxu1 %v1904_v34  ;;  %v481_v5 = vpack.c.bf16 %v459_v3, %v457_v2  ;;  %v458_v7 = vld [vmem:[%s2394_s23 + $0x90] sm:$0xff]  ;;  %v461_v8 = vld [vmem:[%s2394_s23 + $0xa8] sm:$0xff]  ;;  %v463_v9 = vld [vmem:[%s2394_s23 + $0xb8] sm:$0xff] }
  0xa7   : > { %691 = vmatpush1.bf16.msra.mxu0 %v1866_v11  ;;  %1644 = vmatprep.subr.bf16.mxu1 %v1905_v36  ;;  %v480_v10 = vpack.c.bf16 %v458_v7, %v456_v6  ;;  %v483_v11 = vpack.c.bf16 %v463_v9, %v461_v8  ;;  %v462_v13 = vld [vmem:[%s2394_s23 + $0xb0] sm:$0xff]  ;;  %v465_v14 = vld [vmem:[%s2394_s23 + $0xc8] sm:$0xff]  ;;  %v467_v15 = vld [vmem:[%s2394_s23 + $0xd8] sm:$0xff] }
  0xa8   : > { %692 = vmatprep.subr.bf16.mxu0 %v1867_v12  ;;  %v460_v12 = vld [vmem:[%s2394_s23 + $0xa0] sm:$0xff]  ;;  %v1908_v27 = vld [vmem:[#allocation8 + $0x28] sm:$0xff]   ;;  %v1909_v28 = vld [vmem:[#allocation8 + $0x70] sm:$0xff]  }
  0xa9   : > { %v468_v24 = vld [vmem:[%s2394_s23 + $0xe0] sm:$0xff]  ;;  %v1912_v31 = vld [vmem:[#allocation8 + $0x38] sm:$0xff]   ;;  %v1915_v1 = vld [vmem:[#allocation9 + $0x10] sm:$0xff]  }
  0xaa   : > { %1645 = vmatpush3.bf16.msra.mxu1 %v1906_v38  ;;  %v1913_v32 = vld [vmem:[#allocation9] sm:$0xff]  }
  0xab   : > { %693 = vmatpush1.bf16.msra.mxu0 %v1869_v16  ;;  %1646 = vmatprep.subr.bf16.mxu1 %v1907_v40  ;;  %v482_v16 = vpack.c.bf16 %v462_v13, %v460_v12  ;;  %v892_v36 = vld [vmem:[%s2580_s2] sm:$0x3] }
  0xac   : > { %694 = vmatprep.subr.bf16.mxu0 %v1870_v17  ;;  %v485_v17 = vpack.c.bf16 %v467_v15, %v465_v14 }
  0xae   : > { %1647 = vmatpush3.bf16.msra.mxu1 %v1908_v27 }
  0xaf   : > { %695 = vmatpush1.bf16.msra.mxu0 %v1872_v18  ;;  %v464_v18 = vld [vmem:[%s2394_s23 + $0xc0] sm:$0xff]  ;;  %1648 = vmatprep.subr.bf16.mxu1 %v1909_v28 }
  0xb0   : > { %696 = vmatprep.subr.bf16.mxu0 %v1873_v19  ;;  %v466_v19 = vld [vmem:[%s2394_s23 + $0xd0] sm:$0xff] }
  0xb1   : > { %v484_v22 = vpack.c.bf16 %v466_v19, %v464_v18 }
  0xb3   : > { %697 = vmatpush1.bf16.msra.mxu0 %v1875_v20  ;;  %v469_v20 = vld [vmem:[%s2394_s23 + $0xe8] sm:$0xff] }
  0xb4   : > { %698 = vmatprep.subr.bf16.mxu0 %v1876_v21  ;;  %v471_v21 = vld [vmem:[%s2394_s23 + $0xf8] sm:$0xff] }
  0xb7   : > { %699 = vmatpush1.bf16.msra.mxu0 %v1878_v23  ;;  %v487_v23 = vpack.c.bf16 %v471_v21, %v469_v20 }
  0xb8   : > { %700 = vmatprep.subr.bf16.mxu0 %v1879_v25  ;;  %v470_v25 = vld [vmem:[%s2394_s23 + $0xf0] sm:$0xff]  ;;  %s2137_s23 = smov [#allocation11]  }
  0xb9   : > { %v486_v26 = vpack.c.bf16 %v470_v25, %v468_v24  ;;  %s2039_s9 = sshll.u32 %s2137_s23, 4  ;;  %s2040_s9 = int_to_ptr.vmem [resolvable:$false] %s2039_s9 }
  0xba   : > { %s2041_s11 = scalar_lea.vmem %s2040_s9, 4096  ;;  %p2042_p11 = scmp.lt.s32.totalorder %s2526_s14, %s2040_s9 }
  0xbb   : > { %701 = vmatpush1.bf16.msra.mxu0 %v1881_v29  ;;  %v1910_v29 = vld [vmem:[#allocation8 + $0x30] sm:$0xff]   ;;  %p2043_p5 = scmp.lt.s32.totalorder %s2041_s11, %s2035_s7 }
  0xbc   : > { %702 = vmatprep.subr.bf16.mxu0 %v1882_v30  ;;  %1649 = vmatpush3.bf16.msra.mxu1 %v1910_v29  ;;  %v1911_v30 = vld [vmem:[#allocation8 + $0x78] sm:$0xff]  }
  0xbd   : > { %1650 = vmatprep.subr.bf16.mxu1 %v1911_v30  ;;  %p2044_p9 = por %p2043_p5, %p2042_p11 }
  0xbf   : > { %703 = vmatpush1.bf16.msra.mxu0 %v1884_v33  ;;  %v894_v33 = vlaneseq  ;;  %p2045_p0 = pnand %p2044_p9, %p2038_p10 }
  0xc0   : > { %704 = vmatprep.subr.bf16.mxu0 %v1885_v35  ;;  %1651 = vmatpush3.bf16.msra.mxu1 %v1912_v31 }
  0xc1   : > { %1716 = vmatprep.subr.bf16.mxu1 %v1913_v32  ;;  %v895_v34 = vshrl.u32 %v894_v33, 7 }
  0xc3   : > { %705 = vmatpush1.bf16.msra.mxu0 %v1887_v37  ;;  %v896_v35 = vsub.s32 0, %v895_v34  ;;  %v900_v37 = vsub.s32 1, %v895_v34 }
  0xc4   : > { %706 = vmatprep.subr.bf16.mxu0 %v1888_v39 }
  0xc5   : > { %v2443_v38 = vrot.slane %v892_v36, %v896_v35  ;;  %v2445_v39 = vrot.slane %v892_v36, %v900_v37 }
  0xc7   : > { %707 = vmatpush1.bf16.msra.mxu0 %v1890_v41 }
  0xc8   : > { %708 = vmatprep.subr.bf16.mxu0 %v1891_v42 }
  0xcb   : > { %709 = vmatpush1.bf16.msra.mxu0 %v1893_v43 }
  0xcc   : > { %710 = vmatprep.subr.bf16.mxu0 %v1894_v44 }
  0xcf   : > { %711 = vmatpush1.bf16.msra.mxu0 %v1896_v45 }
  0xd2   : > { %713 = vmatmul.mubr.bf16.vlgmr.msra.gmra.mrb[0].mxu0 %v472_v50 }
  0xd3   : > { %722 = vmatprep.mubr.bf16.mxu0 %v475_v51 }
  0xda   : > { %723 = vmatmul.mubr.bf16.gmra.mrb[4].mxu0 %v474_v56 }
  0xdb   : > { %732 = vmatprep.mubr.bf16.mxu0 %v477_v57  ;;  %v1914_v57 = vld [vmem:[#allocation9 + $0x8] sm:$0xff]  }
  0xe2   : > { %733 = vmatmul.mubr.bf16.gmra.mrb[8].mxu0 %v476_v62 }
  0xe3   : > { %742 = vmatprep.mubr.bf16.mxu0 %v479_v63 }
  0xea   : > { %743 = vmatmul.mubr.bf16.gmra.mrb[12].mxu0 %v478_v4 }
  0xeb   : > { %752 = vmatprep.mubr.bf16.mxu0 %v481_v5 }
  0xf2   : > { %753 = vmatmul.mubr.bf16.gmra.mrb[16].mxu0 %v480_v10 }
  0xf3   : > { %762 = vmatprep.mubr.bf16.mxu0 %v483_v11 }
  0xfa   : > { %763 = vmatmul.mubr.bf16.gmra.mrb[20].mxu0 %v482_v16 }
  0xfb   : > { %772 = vmatprep.mubr.bf16.mxu0 %v485_v17 }
 0x102   : > { %773 = vmatmul.mubr.bf16.gmra.mrb[24].mxu0 %v484_v22 }
 0x103   : > { %782 = vmatprep.mubr.bf16.mxu0 %v487_v23 }
 0x10a   : > { %783 = vmatmul.mubr.bf16.gmra.mrb[28].mxu0 %v486_v26 }
 0x1a5   : > { %v714_v40 = vpop.f32.mrb[0].mxu0 }
 0x1a6   : > { %v904_v41 = vadd.f32 %v2443_v38, %v714_v40  ;;  %v716_v42 = vpop.f32.mrb[1].mxu0 }
 0x1a7   : > { %v905_v43 = vadd.f32 %v2445_v39, %v716_v42  ;;  %v718_v44 = vpop.f32.mrb[2].mxu0 }
 0x1a8   : > { %v906_v45 = vadd.f32 %v2443_v38, %v718_v44  ;;  %v720_v46 = vpop.f32.mrb[3].mxu0  ;;  %v936_v48 = vmax.f32 %v904_v41, 0.0 }
 0x1a9   : > { %v907_v47 = vadd.f32 %v2445_v39, %v720_v46  ;;  %v937_v50 = vmax.f32 %v905_v43, 0.0 }
 0x1aa   : > { %v938_v49 = vmax.f32 %v906_v45, 0.0 }
 0x1ab   : > { %v939_v51 = vmax.f32 %v907_v47, 0.0 }
 0x1ac   : > { %v968_v52 = vpack.c.bf16 %v938_v49, %v936_v48 }
 0x1ad   : > { %v724_v53 = vpop.f32.mrb[4].mxu0  ;;  %v969_v54 = vpack.c.bf16 %v939_v51, %v937_v50 }
 0x1ae   : > { %v908_v55 = vadd.f32 %v2443_v38, %v724_v53  ;;  %v726_v56 = vpop.f32.mrb[5].mxu0 }
 0x1af   : > { %v909_v58 = vadd.f32 %v2445_v39, %v726_v56  ;;  %v728_v59 = vpop.f32.mrb[6].mxu0  ;;  %1151 = vmatprep.mubr.bf16.mxu1 %v969_v54 }
 0x1b0   : > { %v910_v60 = vadd.f32 %v2443_v38, %v728_v59  ;;  %v730_v61 = vpop.f32.mrb[7].mxu0  ;;  %1152 = vmatmul.mubr.bf16.vlgmr.msra.gmra.mrb[0].mxu1 %v968_v52  ;;  %v940_v63 = vmax.f32 %v908_v55, 0.0 }
 0x1b1   : > { %v911_v62 = vadd.f32 %v2445_v39, %v730_v61  ;;  %1717 = vmatpush3.bf16.msra.mxu1 %v1913_v32  ;;  %v941_v2 = vmax.f32 %v909_v58, 0.0 }
 0x1b2   : > { %v942_v0 = vmax.f32 %v910_v60, 0.0  ;;  %1718 = vmatprep.subr.bf16.mxu1 %v1914_v57 }
 0x1b3   : > { %v943_v3 = vmax.f32 %v911_v62, 0.0 }
 0x1b4   : > { %v970_v4 = vpack.c.bf16 %v942_v0, %v940_v63 }
 0x1b5   : > { %v971_v5 = vpack.c.bf16 %v943_v3, %v941_v2  ;;  %v734_v6 = vpop.f32.mrb[8].mxu0  ;;  %1719 = vmatpush3.bf16.msra.mxu1 %v1914_v57 }
 0x1b6   : > { %v912_v7 = vadd.f32 %v2443_v38, %v734_v6  ;;  %v736_v8 = vpop.f32.mrb[9].mxu0  ;;  %1720 = vmatprep.subr.bf16.mxu1 %v1915_v1 }
 0x1b7   : > { %v913_v9 = vadd.f32 %v2445_v39, %v736_v8  ;;  %v738_v10 = vpop.f32.mrb[10].mxu0  ;;  %1159 = vmatprep.mubr.bf16.mxu1 %v971_v5 }
 0x1b8   : > { %v914_v11 = vadd.f32 %v2443_v38, %v738_v10  ;;  %v740_v12 = vpop.f32.mrb[11].mxu0  ;;  %1160 = vmatmul.mubr.bf16.gmra.mrb[4].mxu1 %v970_v4  ;;  %v944_v14 = vmax.f32 %v912_v7, 0.0 }
 0x1b9   : > { %v915_v13 = vadd.f32 %v2445_v39, %v740_v12  ;;  %1721 = vmatpush3.bf16.msra.mxu1 %v1915_v1  ;;  %v945_v16 = vmax.f32 %v913_v9, 0.0 }
 0x1ba   : > { %v946_v15 = vmax.f32 %v914_v11, 0.0 }
 0x1bb   : > { %v947_v17 = vmax.f32 %v915_v13, 0.0 }
 0x1bc   : > { %v972_v18 = vpack.c.bf16 %v946_v15, %v944_v14 }
 0x1bd   : > { %v973_v19 = vpack.c.bf16 %v947_v17, %v945_v16  ;;  %v744_v20 = vpop.f32.mrb[12].mxu0 }
 0x1be   : > { %v916_v21 = vadd.f32 %v2443_v38, %v744_v20  ;;  %v746_v22 = vpop.f32.mrb[13].mxu0 }
 0x1bf   : > { %v917_v23 = vadd.f32 %v2445_v39, %v746_v22  ;;  %v748_v24 = vpop.f32.mrb[14].mxu0  ;;  %1167 = vmatprep.mubr.bf16.mxu1 %v973_v19 }
 0x1c0   : > { %v918_v25 = vadd.f32 %v2443_v38, %v748_v24  ;;  %v750_v26 = vpop.f32.mrb[15].mxu0  ;;  %1168 = vmatmul.mubr.bf16.gmra.mrb[8].mxu1 %v972_v18  ;;  %v948_v28 = vmax.f32 %v916_v21, 0.0 }
 0x1c1   : > { %v919_v27 = vadd.f32 %v2445_v39, %v750_v26  ;;  %v949_v30 = vmax.f32 %v917_v23, 0.0 }
 0x1c2   : > { %v950_v29 = vmax.f32 %v918_v25, 0.0 }
 0x1c3   : > { %v951_v31 = vmax.f32 %v919_v27, 0.0 }
 0x1c4   : > { %v974_v32 = vpack.c.bf16 %v950_v29, %v948_v28  ;;  %v1916_v28 = vld [vmem:[#allocation9 + $0x18] sm:$0xff]   ;;  %v1917_v29 = vld [vmem:[#allocation9 + $0x20] sm:$0xff]  }
 0x1c5   : > { %v975_v33 = vpack.c.bf16 %v951_v31, %v949_v30  ;;  %v754_v34 = vpop.f32.mrb[16].mxu0  ;;  %1722 = vmatprep.subr.bf16.mxu1 %v1916_v28  ;;  %v1918_v30 = vld [vmem:[#allocation9 + $0x28] sm:$0xff]  }
 0x1c6   : > { %v920_v35 = vadd.f32 %v2443_v38, %v754_v34  ;;  %v756_v36 = vpop.f32.mrb[17].mxu0  ;;  %1723 = vmatpush3.bf16.msra.mxu1 %v1916_v28 }
 0x1c7   : > { %v921_v37 = vadd.f32 %v2445_v39, %v756_v36  ;;  %v758_v40 = vpop.f32.mrb[18].mxu0  ;;  %1175 = vmatprep.mubr.bf16.mxu1 %v975_v33  ;;  %1724 = vmatprep.subr.bf16.mxu1 %v1917_v29 }
 0x1c8   : > { %v922_v41 = vadd.f32 %v2443_v38, %v758_v40  ;;  %v760_v42 = vpop.f32.mrb[19].mxu0  ;;  %1176 = vmatmul.mubr.bf16.gmra.mrb[12].mxu1 %v974_v32  ;;  %v952_v44 = vmax.f32 %v920_v35, 0.0  ;;  %v2482_v32 = vld [vmem:[%s2582_s4] ss:$0 sm:$0xff] }
 0x1c9   : > { %v923_v43 = vadd.f32 %v2445_v39, %v760_v42  ;;  %v953_v46 = vmax.f32 %v921_v37, 0.0 }
 0x1ca   : > { %v954_v45 = vmax.f32 %v922_v41, 0.0  ;;  %1725 = vmatpush3.bf16.msra.mxu1 %v1917_v29 }
 0x1cb   : > { %v955_v47 = vmax.f32 %v923_v43, 0.0  ;;  %1726 = vmatprep.subr.bf16.mxu1 %v1918_v30 }
 0x1cc   : > { %v976_v48 = vpack.c.bf16 %v954_v45, %v952_v44 }
 0x1cd   : > { %v977_v49 = vpack.c.bf16 %v955_v47, %v953_v46  ;;  %v764_v50 = vpop.f32.mrb[20].mxu0 }
 0x1ce   : > { %v924_v51 = vadd.f32 %v2443_v38, %v764_v50  ;;  %v766_v52 = vpop.f32.mrb[21].mxu0  ;;  %1727 = vmatpush3.bf16.msra.mxu1 %v1918_v30 }
 0x1cf   : > { %v925_v53 = vadd.f32 %v2445_v39, %v766_v52  ;;  %v768_v54 = vpop.f32.mrb[22].mxu0  ;;  %1183 = vmatprep.mubr.bf16.mxu1 %v977_v49 }
 0x1d0   : > { %v926_v55 = vadd.f32 %v2443_v38, %v768_v54  ;;  %v770_v56 = vpop.f32.mrb[23].mxu0  ;;  %1184 = vmatmul.mubr.bf16.gmra.mrb[16].mxu1 %v976_v48  ;;  %v956_v58 = vmax.f32 %v924_v51, 0.0 }
 0x1d1   : > { %v927_v57 = vadd.f32 %v2445_v39, %v770_v56  ;;  %v957_v60 = vmax.f32 %v925_v53, 0.0 }
 0x1d2   : > { %v958_v59 = vmax.f32 %v926_v55, 0.0 }
 0x1d3   : > { %v959_v61 = vmax.f32 %v927_v57, 0.0 }
 0x1d4   : > { %v978_v62 = vpack.c.bf16 %v958_v59, %v956_v58 }
 0x1d5   : > { %v979_v63 = vpack.c.bf16 %v959_v61, %v957_v60  ;;  %v774_v0 = vpop.f32.mrb[24].mxu0 }
 0x1d6   : > { %v928_v1 = vadd.f32 %v2443_v38, %v774_v0  ;;  %v776_v2 = vpop.f32.mrb[25].mxu0 }
 0x1d7   : > { %v929_v3 = vadd.f32 %v2445_v39, %v776_v2  ;;  %v778_v4 = vpop.f32.mrb[26].mxu0  ;;  %1191 = vmatprep.mubr.bf16.mxu1 %v979_v63 }
 0x1d8   : > { %v930_v5 = vadd.f32 %v2443_v38, %v778_v4  ;;  %v780_v6 = vpop.f32.mrb[27].mxu0  ;;  %1192 = vmatmul.mubr.bf16.gmra.mrb[20].mxu1 %v978_v62  ;;  %v960_v8 = vmax.f32 %v928_v1, 0.0 }
 0x1d9   : > { %v931_v7 = vadd.f32 %v2445_v39, %v780_v6  ;;  %v961_v10 = vmax.f32 %v929_v3, 0.0 }
 0x1da   : > { %v962_v9 = vmax.f32 %v930_v5, 0.0 }
 0x1db   : > { %v963_v11 = vmax.f32 %v931_v7, 0.0 }
 0x1dc   : > { %v980_v12 = vpack.c.bf16 %v962_v9, %v960_v8 }
 0x1dd   : > { %v981_v13 = vpack.c.bf16 %v963_v11, %v961_v10  ;;  %v784_v14 = vpop.f32.mrb[28].mxu0 }
 0x1de   : > { %v932_v15 = vadd.f32 %v2443_v38, %v784_v14  ;;  %v786_v16 = vpop.f32.mrb[29].mxu0 }
 0x1df   : > { %v933_v17 = vadd.f32 %v2445_v39, %v786_v16  ;;  %v788_v18 = vpop.f32.mrb[30].mxu0  ;;  %1199 = vmatprep.mubr.bf16.mxu1 %v981_v13 }
 0x1e0   : > { %v934_v19 = vadd.f32 %v2443_v38, %v788_v18  ;;  %v790_v20 = vpop.f32.mrb[31].mxu0  ;;  %1200 = vmatmul.mubr.bf16.gmra.mrb[24].mxu1 %v980_v12  ;;  %v964_v22 = vmax.f32 %v932_v15, 0.0  ;;  %v1919_v38 = vld [vmem:[#allocation9 + $0x30] sm:$0xff]  }
 0x1e1   : > { %v935_v21 = vadd.f32 %v2445_v39, %v790_v20  ;;  %v965_v24 = vmax.f32 %v933_v17, 0.0  ;;  %1728 = vmatprep.subr.bf16.mxu1 %v1919_v38  ;;  %v1920_v39 = vld [vmem:[#allocation9 + $0x38] sm:$0xff]  }
 0x1e2   : > { %v966_v23 = vmax.f32 %v934_v19, 0.0  ;;  %1729 = vmatpush3.bf16.msra.mxu1 %v1919_v38 }
 0x1e3   : > { %v967_v25 = vmax.f32 %v935_v21, 0.0  ;;  %1730 = vmatprep.subr.bf16.mxu1 %v1920_v39 }
 0x1e4   : > { %v982_v26 = vpack.c.bf16 %v966_v23, %v964_v22 }
 0x1e5   : > { %v983_v27 = vpack.c.bf16 %v967_v25, %v965_v24 }
 0x1e6   : > { %1731 = vmatpush3.bf16.msra.mxu1 %v1920_v39 }
 0x1e7   : > { %1207 = vmatprep.mubr.bf16.mxu1 %v983_v27 }
 0x1e8   : > { %1208 = vmatmul.mubr.bf16.gmra.mrb[28].mxu1 %v982_v26 }
 0x283   : > { %v1652_v31 = vpop.f32.mrb[0].mxu1 }
 0x284   : > { %v1653_v33 = vpop.f32.mrb[1].mxu1 }
 0x285   : > { %v1654_v34 = vadd.f32 %v1653_v33, %v1652_v31  ;;  %v1655_v35 = vpop.f32.mrb[2].mxu1 }
 0x286   : > { %v1656_v36 = vpop.f32.mrb[3].mxu1 }
 0x287   : > { %v1154_v37 = vadd.f32 %v1654_v34, %v2482_v32  ;;  %v1657_v40 = vadd.f32 %v1656_v36, %v1655_v35 }
 0x289   : > { %v1157_v41 = vadd.f32 %v1657_v40, %v2482_v32  ;;  %v1216_v42 = vmax.f32 %v1154_v37, 0.0 }
 0x28b   : > { %v1217_v43 = vmax.f32 %v1157_v41, 0.0  ;;  %v1658_v44 = vpop.f32.mrb[4].mxu1 }
 0x28c   : > { %v1659_v45 = vpop.f32.mrb[5].mxu1 }
 0x28d   : > { %v1660_v46 = vadd.f32 %v1659_v45, %v1658_v44  ;;  %v1661_v47 = vpop.f32.mrb[6].mxu1  ;;  %v1232_v48 = vpack.c.bf16 %v1217_v43, %v1216_v42 }
 0x28e   : > { %v1662_v49 = vpop.f32.mrb[7].mxu1 }
 0x28f   : > { %v1162_v50 = vadd.f32 %v1660_v46, %v2482_v32  ;;  %v1663_v51 = vadd.f32 %v1662_v49, %v1661_v47  ;;  %1732 = vmatprep.mubr.bf16.mxu1 %v1232_v48 }
 0x291   : > { %v1165_v52 = vadd.f32 %v1663_v51, %v2482_v32  ;;  %v1218_v53 = vmax.f32 %v1162_v50, 0.0 }
 0x293   : > { %v1219_v54 = vmax.f32 %v1165_v52, 0.0  ;;  %v1664_v55 = vpop.f32.mrb[8].mxu1 }
 0x294   : > { %v1665_v56 = vpop.f32.mrb[9].mxu1 }
 0x295   : > { %v1233_v57 = vpack.c.bf16 %v1219_v54, %v1218_v53  ;;  %v1666_v58 = vadd.f32 %v1665_v56, %v1664_v55  ;;  %v1667_v59 = vpop.f32.mrb[10].mxu1 }
 0x296   : > { %v1668_v60 = vpop.f32.mrb[11].mxu1 }
 0x297   : > { %v1170_v61 = vadd.f32 %v1666_v58, %v2482_v32  ;;  %v1669_v62 = vadd.f32 %v1668_v60, %v1667_v59  ;;  %1733 = vmatmul.mubr.bf16.vlgmr.msra.gmra.mrb[32].mxu1 %v1233_v57  ;;  %v1619_v59 = vld [vmem:[%s2584_s6] ss:$0 sm:$0xff] }
 0x299   : > { %v1173_v63 = vadd.f32 %v1669_v62, %v2482_v32  ;;  %v1220_v0 = vmax.f32 %v1170_v61, 0.0 }
 0x29b   : > { %v1221_v1 = vmax.f32 %v1173_v63, 0.0  ;;  %v1670_v2 = vpop.f32.mrb[12].mxu1 }
 0x29c   : > { %v1671_v3 = vpop.f32.mrb[13].mxu1 }
 0x29d   : > { %v1672_v4 = vadd.f32 %v1671_v3, %v1670_v2  ;;  %v1673_v5 = vpop.f32.mrb[14].mxu1  ;;  %v1234_v6 = vpack.c.bf16 %v1221_v1, %v1220_v0 }
 0x29e   : > { %v1674_v7 = vpop.f32.mrb[15].mxu1 }
 0x29f   : > { %v1178_v8 = vadd.f32 %v1672_v4, %v2482_v32  ;;  %v1675_v9 = vadd.f32 %v1674_v7, %v1673_v5  ;;  %1736 = vmatprep.mubr.bf16.mxu1 %v1234_v6 }
 0x2a1   : > { %v1181_v10 = vadd.f32 %v1675_v9, %v2482_v32  ;;  %v1222_v11 = vmax.f32 %v1178_v8, 0.0 }
 0x2a3   : > { %v1223_v12 = vmax.f32 %v1181_v10, 0.0  ;;  %v1676_v13 = vpop.f32.mrb[16].mxu1 }
 0x2a4   : > { %v1677_v14 = vpop.f32.mrb[17].mxu1 }
 0x2a5   : > { %v1678_v15 = vadd.f32 %v1677_v14, %v1676_v13  ;;  %v1679_v16 = vpop.f32.mrb[18].mxu1  ;;  %v1235_v17 = vpack.c.bf16 %v1223_v12, %v1222_v11 }
 0x2a6   : > { %v1680_v18 = vpop.f32.mrb[19].mxu1 }
 0x2a7   : > { %v1186_v19 = vadd.f32 %v1678_v15, %v2482_v32  ;;  %v1681_v20 = vadd.f32 %v1680_v18, %v1679_v16  ;;  %1737 = vmatmul.mubr.bf16.gmra.mrb[36].mxu1 %v1235_v17 }
 0x2a9   : > { %v1189_v21 = vadd.f32 %v1681_v20, %v2482_v32  ;;  %v1224_v22 = vmax.f32 %v1186_v19, 0.0 }
 0x2ab   : > { %v1225_v23 = vmax.f32 %v1189_v21, 0.0  ;;  %v1682_v24 = vpop.f32.mrb[20].mxu1 }
 0x2ac   : > { %v1683_v25 = vpop.f32.mrb[21].mxu1 }
 0x2ad   : > { %v1684_v26 = vadd.f32 %v1683_v25, %v1682_v24  ;;  %v1685_v27 = vpop.f32.mrb[22].mxu1  ;;  %v1236_v28 = vpack.c.bf16 %v1225_v23, %v1224_v22 }
 0x2ae   : > { %v1686_v29 = vpop.f32.mrb[23].mxu1 }
 0x2af   : > { %v1194_v30 = vadd.f32 %v1684_v26, %v2482_v32  ;;  %v1687_v38 = vadd.f32 %v1686_v29, %v1685_v27  ;;  %1740 = vmatprep.mubr.bf16.mxu1 %v1236_v28 }
 0x2b1   : > { %v1197_v39 = vadd.f32 %v1687_v38, %v2482_v32  ;;  %v1226_v31 = vmax.f32 %v1194_v30, 0.0 }
 0x2b3   : > { %v1227_v33 = vmax.f32 %v1197_v39, 0.0  ;;  %v1688_v34 = vpop.f32.mrb[24].mxu1 }
 0x2b4   : > { %v1689_v35 = vpop.f32.mrb[25].mxu1 }
 0x2b5   : > { %v1690_v36 = vadd.f32 %v1689_v35, %v1688_v34  ;;  %v1691_v37 = vpop.f32.mrb[26].mxu1  ;;  %v1237_v40 = vpack.c.bf16 %v1227_v33, %v1226_v31 }
 0x2b6   : > { %v1692_v41 = vpop.f32.mrb[27].mxu1 }
 0x2b7   : > { %v1202_v42 = vadd.f32 %v1690_v36, %v2482_v32  ;;  %v1693_v43 = vadd.f32 %v1692_v41, %v1691_v37  ;;  %1741 = vmatmul.mubr.bf16.gmra.mrb[40].mxu1 %v1237_v40 }
 0x2b9   : > { %v1205_v44 = vadd.f32 %v1693_v43, %v2482_v32  ;;  %v1228_v45 = vmax.f32 %v1202_v42, 0.0 }
 0x2bb   : > { %v1229_v46 = vmax.f32 %v1205_v44, 0.0  ;;  %v1694_v47 = vpop.f32.mrb[28].mxu1 }
 0x2bc   : > { %v1695_v48 = vpop.f32.mrb[29].mxu1 }
 0x2bd   : > { %v1696_v49 = vadd.f32 %v1695_v48, %v1694_v47  ;;  %v1697_v50 = vpop.f32.mrb[30].mxu1  ;;  %v1238_v51 = vpack.c.bf16 %v1229_v46, %v1228_v45 }
 0x2be   : > { %v1698_v52 = vpop.f32.mrb[31].mxu1 }
 0x2bf   : > { %v1210_v53 = vadd.f32 %v1696_v49, %v2482_v32  ;;  %v1699_v54 = vadd.f32 %v1698_v52, %v1697_v50  ;;  %1744 = vmatprep.mubr.bf16.mxu1 %v1238_v51 }
 0x2c1   : > { %v1213_v55 = vadd.f32 %v1699_v54, %v2482_v32  ;;  %v1230_v56 = vmax.f32 %v1210_v53, 0.0 }
 0x2c3   : > { %v1231_v57 = vmax.f32 %v1213_v55, 0.0 }
 0x2c5   : > { %v1239_v58 = vpack.c.bf16 %v1231_v57, %v1230_v56 }
 0x2c7   : > { %1745 = vmatmul.mubr.bf16.gmra.mrb[44].mxu1 %v1239_v58 }
 0x36a   : > { %v1734_v60 = vpop.f32.mrb[32].mxu1 }
 0x36b   : > { %v1354_v61 = vadd.f32 %v1734_v60, %v1619_v59  ;;  %v1345_v62 = vpop.f32.mrb[33].mxu1 }
 0x36c   : > { %v1346_v63 = vadd.f32 %v1619_v59, %v1345_v62  ;;  %v1735_v0 = vpop.f32.mrb[34].mxu1 }
 0x36d   : > { %1410 = vst [vmem:[%s2504_s24 + $0x10] sm:$0xff] %v1354_v61  ;;  %v1357_v32 = vadd.f32 %v1735_v0, %v1619_v59  ;;  %v1348_v1 = vpop.f32.mrb[35].mxu1 }
 0x36e   : > { %1408 = vst [vmem:[%s2504_s24] sm:$0xff] %v1346_v63  ;;  %v1349_v2 = vadd.f32 %v1619_v59, %v1348_v1 }
 0x36f   : > { %1411 = vst [vmem:[%s2504_s24 + $0x18] sm:$0xff] %v1357_v32 }
 0x370   : > { %1409 = vst [vmem:[%s2504_s24 + $0x8] sm:$0xff] %v1349_v2 }
 0x37a   : > { %v1738_v3 = vpop.f32.mrb[36].mxu1 }
 0x37b   : > { %v1370_v4 = vadd.f32 %v1738_v3, %v1619_v59  ;;  %v1361_v5 = vpop.f32.mrb[37].mxu1 }
 0x37c   : > { %v1362_v6 = vadd.f32 %v1619_v59, %v1361_v5  ;;  %v1739_v7 = vpop.f32.mrb[38].mxu1 }
 0x37d   : > { %1414 = vst [vmem:[%s2504_s24 + $0x30] sm:$0xff] %v1370_v4  ;;  %v1373_v8 = vadd.f32 %v1739_v7, %v1619_v59  ;;  %v1364_v9 = vpop.f32.mrb[39].mxu1 }
 0x37e   : > { %1412 = vst [vmem:[%s2504_s24 + $0x20] sm:$0xff] %v1362_v6  ;;  %v1365_v10 = vadd.f32 %v1619_v59, %v1364_v9 }
 0x37f   : > { %1415 = vst [vmem:[%s2504_s24 + $0x38] sm:$0xff] %v1373_v8 }
 0x380   : > { %1413 = vst [vmem:[%s2504_s24 + $0x28] sm:$0xff] %v1365_v10 }
 0x38a   : > { %v1742_v11 = vpop.f32.mrb[40].mxu1 }
 0x38b   : > { %v1386_v12 = vadd.f32 %v1742_v11, %v1619_v59  ;;  %v1377_v13 = vpop.f32.mrb[41].mxu1 }
 0x38c   : > { %v1378_v14 = vadd.f32 %v1619_v59, %v1377_v13  ;;  %v1743_v15 = vpop.f32.mrb[42].mxu1 }
 0x38d   : > { %1418 = vst [vmem:[%s2504_s24 + $0x50] sm:$0xff] %v1386_v12  ;;  %v1389_v16 = vadd.f32 %v1743_v15, %v1619_v59  ;;  %v1380_v17 = vpop.f32.mrb[43].mxu1 }
 0x38e   : > { %1416 = vst [vmem:[%s2504_s24 + $0x40] sm:$0xff] %v1378_v14  ;;  %v1381_v18 = vadd.f32 %v1619_v59, %v1380_v17 }
 0x38f   : > { %1419 = vst [vmem:[%s2504_s24 + $0x58] sm:$0xff] %v1389_v16 }
 0x390   : > { %1417 = vst [vmem:[%s2504_s24 + $0x48] sm:$0xff] %v1381_v18 }
 0x39a   : > { %v1746_v19 = vpop.f32.mrb[44].mxu1 }
 0x39b   : > { %v1402_v20 = vadd.f32 %v1746_v19, %v1619_v59  ;;  %v1393_v21 = vpop.f32.mrb[45].mxu1 }
 0x39c   : > { %v1394_v22 = vadd.f32 %v1619_v59, %v1393_v21  ;;  %v1747_v23 = vpop.f32.mrb[46].mxu1 }
 0x39d   : > { %1422 = vst [vmem:[%s2504_s24 + $0x70] sm:$0xff] %v1402_v20  ;;  %v1405_v24 = vadd.f32 %v1747_v23, %v1619_v59  ;;  %v1396_v25 = vpop.f32.mrb[47].mxu1 }
 0x39e   : > { %1420 = vst [vmem:[%s2504_s24 + $0x60] sm:$0xff] %v1394_v22  ;;  %v1397_v26 = vadd.f32 %v1619_v59, %v1396_v25 }
 0x39f   : > { %1423 = vst [vmem:[%s2504_s24 + $0x78] sm:$0xff] %v1405_v24 }
 0x3a0   : > { %1421 = vst [vmem:[%s2504_s24 + $0x68] sm:$0xff] %v1397_v26 }
 0x3a1   : > { %2048 = shalt.err (!%p2045_p0)
}
 0x3a2   : > { %s2049_s13 = scalar_lea.hbm %s2524_s16, 2048  ;;  %s2053_s18 = scalar_lea.hbm %s2612_s30, 4096 }
 0x3a3   : > { %p2050_p4 = scmp.ne.s32.totalorder %s2524_s16, %s2049_s13  ;;  %p2054_p12 = scmp.lt.u32.totalorder %s2524_s16, %s2612_s30 }
 0x3a4   : > { %p2055_p1 = scmp.lt.u32.totalorder %s2053_s18, %s2049_s13  ;;  %p2057_p13 = scmp.lt.u32.totalorder %s2049_s13, %s2524_s16 }
 0x3a5   : > { %p2051_p8 = pnand %p2050_p4, %p2334_p3 }
 0x3a6   : > { %p2056_p7 = por %p2055_p1, %p2054_p12 }
 0x3a7   : > { %p2052_p2 = pneg %p2051_p8 }
 0x3a8   : > { %p2058_p6 = por %p2057_p13, %p2056_p7 }
 0x3aa   : > { %p2059_p10 = pnand %p2058_p6, %p2052_p2 }
 0x3ac   : > { %2062 = shalt.err (!%p2059_p10)
}
 0x3ad   : > { %s2138_s8 = smov 128   ;;  %s2139_s10 = smov 8  }
 0x3ae   : > { %1762 = dma.vmem_to_hbm [thread:$0]  (%p2334_p3), %s2526_s14, 2048, %s2524_s16, %s1425_s27, %s2138_s8, %s2138_s8, %s2139_s10  }
 0x3af PF: > { %s2613_s19 = sld [smem:[#allocation16_spill]]  ;;  %s2614_s7 = sld [smem:[#allocation17_spill]] }
 0x3b0   : > { %p2616_p5 = scmp.ge.s32.totalorder %s2125_s29, 2 }
 0x3b5   : > { %s1453_s23 = sand.u32 1, %s2613_s19   ;;  %p2615_p11 = scmp.ne.s32.totalorder %s2614_s7, 0 }
 0x3b6   : > { %s1454_s9 = scalar_lea.sflag [#allocation5], %s1453_s23 }
 0x3b7   : > { %p1779_p9 = pnand %p2616_p5, %p2615_p11 }
 0x3b9   : > { %2100 = dma.done.wait (!%p1779_p9), %s1454_s9, 2048  }
 0x3ba   : > { %2102 = vsyncadd (!%p1779_p9), %s1454_s9, 4294965248  ;;  %s25_s29 = sadd.s32 1, %s2125_s29   ;;  %s2617_s24 = smov %s2109_s25 }
 0x3bb   : > { %p22_p0 = scmp.ge.s32.totalorder %s25_s29, 4   ;;  %s2618_s25 = smov %s2113_s26 }
 0x3bc   : > { %s2619_s26 = smov %s2343_s21  ;;  %s2620_s27 = smov %s2121_s28 }
 0x3bd   : > { %s2621_s28 = smov %s2623_s1  ;;  %24 = sbr.rel (!%p22_p0) target bundleno = 11 (0xb), region = 114 }
 0x3c4   :  { %1459 = vsyncpa [#allocation4], 1 }
 0x3c5   :  { %1461 = vsyncpa [#allocation4 + $0x1], 1 }
 0x3c6   :  { %1462 = vsyncpa [#allocation7], 1 }
 0x3c7   :  { %1463 = vsyncpa [#allocation10], 1 }
 0x3c8   :  { %1464 = vsyncpa [#allocation5], 1 }
 0x3c9   :  { %1466 = vsyncpa [#allocation5 + $0x1], 1 }

</bundles_post_ra>
